<compile_context>
chip_gen: v6e
topology: v6e:2x2x1
jax: 0.10.0
libtpu: 0.0.40
codegen_flags: <defaults>
</compile_context>

<pallas_src>
import jax
import jax.numpy as jnp
from jax.experimental import pallas as pl
from jax.experimental.pallas import tpu as pltpu


def posenc_kernel(lens_ref, w_ref, o_ref):
    """Write one (TB, TL, E) output block as a masked copy of a (TL, E) W tile.

    lens_ref: SMEM [B] int32, scalar-prefetched sequence lengths.
    w_ref:    VMEM (TL, E) tile of W[1:L+1]  (rows lt*TL .. lt*TL+TL-1).
    o_ref:    VMEM (TB, TL, E) output block for batch rows bt*TB .. bt*TB+TB-1.
    """
    lt = pl.program_id(0)          # L-tile index (outer grid axis)
    bt = pl.program_id(1)          # batch-tile index (inner grid axis)
    TB = o_ref.shape[0]
    TL = w_ref.shape[0]
    B = lens_ref.shape[0]

    # Hoisted once per grid step (not per batch row):
    w = w_ref[...]
    # Global sequence position of each element's row in this L-tile.
    # One iota + one add per vreg; the mask is a single compare (no int div).
    row = jax.lax.broadcasted_iota(jnp.int32, w.shape, 0) + lt * TL
    zero = jnp.zeros((), dtype=o_ref.dtype)

    for r in range(TB):                                  # static unroll
        b = jnp.minimum(bt * TB + r, B - 1)              # clamp remainder block
        x_len = lens_ref[b]                              # scalar SMEM read
        o_ref[r] = jnp.where(row < x_len, w, zero).astype(o_ref.dtype)


def _choose_tiles(B, L, E, itemsize, target_bytes=2 << 20, max_tb_unroll=16):
    """Pick (TB, TL) so each output block is ~target_bytes and (8,128)-legal."""
    row_bytes = E * itemsize
    if L * row_bytes <= target_bytes or L <= 8:
        tl = L                                            # full extent: always legal
    else:
        tl = min(L, max(8, ((target_bytes // row_bytes) // 8) * 8))
    tb = 1
    if tl == L and L * row_bytes < target_bytes:
        tb = int(min(B, max(1, target_bytes // (L * row_bytes)), max_tb_unroll))
    return tb, tl


def pos_enc(x, weight):
    """Forward of PosEnc(train=True, pad=True, pad_idx=0).

    x: [B, L, D] or [B, L] float; weight: [max_len+1, E], row 0 == 0 (pad row).
    Returns [B, L, E] in weight.dtype (feed a bf16 table to get bf16 out).
    """
    if x.ndim == 3:
        B, L = x.shape[0], x.shape[1]
        # TODO(synk): if an upstream validity mask / length vector exists, reuse
        # it here instead of re-reading all of x (for D >> E this read dominates).
        x_lens = jnp.sum(jnp.sum(jnp.abs(x), axis=2) != 0, axis=1).astype(jnp.int32)
    elif x.ndim == 2:
        B, L = x.shape
        x_lens = jnp.sum(jnp.abs(x) != 0, axis=1).astype(jnp.int32)
    else:
        raise ValueError("PosEnc expects a 2-D or 3-D input")

    V, E = weight.shape
    assert L <= V - 1, "sequence length exceeds max_len of the position table"

    itemsize = jnp.dtype(weight.dtype).itemsize
    TB, TL = _choose_tiles(B, L, E, itemsize)
    num_lt = pl.cdiv(L, TL)
    num_bt = pl.cdiv(B, TB)

    w_rows = weight[1:L + 1]                      # (L, E): only rows ever used

    cost = pl.CostEstimate(
        flops=0, transcendentals=0,
        bytes_accessed=B * L * E * itemsize + L * E * itemsize + B * 4)

    def build(single_buffer_weight):
        w_kwargs = ({"pipeline_mode": pl.Buffered(1)}
                    if single_buffer_weight else {})
        w_bufs = 1 if single_buffer_weight else 2
        needed = (w_bufs * TL * E + 2 * TB * TL * E) * itemsize + (1 << 20)
        vmem_limit = int(min(64 << 20, max(needed, 16 << 20)))
        return pl.pallas_call(
            posenc_kernel,
            out_shape=jax.ShapeDtypeStruct((B, L, E), weight.dtype),
            grid_spec=pltpu.PrefetchScalarGridSpec(
                num_scalar_prefetch=1,
                # L-tiles outer, batch inner: each W tile is fetched once per
                # L-tile and reused across all batch blocks.
                grid=(num_lt, num_bt),
                in_specs=[
                    pl.BlockSpec((TL, E), lambda lt, bt, lens: (lt, 0),
                                 **w_kwargs),
                ],
                out_specs=pl.BlockSpec((TB, TL, E),
                                       lambda lt, bt, lens: (bt, lt, 0)),
            ),
            compiler_params=pltpu.CompilerParams(
                dimension_semantics=("parallel", "parallel"),
                vmem_limit_bytes=vmem_limit),
            cost_estimate=cost,
        )

    try:
        out = build(True)(x_lens, w_rows)
    except Exception:
        # Fallback if single-buffering the weight spec is rejected by this
        # jax/Mosaic version; semantics are identical, only VMEM use differs.
        out = build(False)(x_lens, w_rows)
    return out


def make_weight(key, max_len, emb_dims):
    # Deterministic synthetic init mirroring nn.Embedding(max_len+1, E,
    # padding_idx=0) + xavier_uniform_ on rows 1: (row 0 stays zero).
    fan_in, fan_out = max_len, emb_dims
    bound = jnp.sqrt(6.0 / (fan_in + fan_out))
    body = jax.random.uniform(key, (max_len, emb_dims),
                              minval=-bound, maxval=bound, dtype=jnp.float32)
    pad_row = jnp.zeros((1, emb_dims), dtype=jnp.float32)
    return jnp.concatenate([pad_row, body], axis=0)       # [max_len+1, E]


def pos_enc_reference(x, weight):
    # Pure-JAX reference of the PyTorch forward (pad=True).
    if x.ndim == 3:
        x_lens = jnp.sum(jnp.sign(jnp.sum(jnp.abs(x), axis=2)), axis=1).astype(jnp.int32)
    else:
        x_lens = jnp.sum(jnp.sign(jnp.abs(x)), axis=1).astype(jnp.int32)
    L = x.shape[1]
    idx = jnp.arange(L)[None, :]
    pos = jnp.where(idx < x_lens[:, None], idx + 1, 0)
    return weight[pos]


if __name__ == "__main__":
    key = jax.random.PRNGKey(0)
    k_w, k_x, k_w2, k_x2 = jax.random.split(key, 4)

    # --- config A: 3-D input --------------------------------------------
    B, L, D = 2, 8, 4
    max_len, emb_dims = 16, 32
    weight = make_weight(k_w, max_len, emb_dims)           # [17, 32]

    x = jax.random.normal(k_x, (B, L, D), dtype=jnp.float32)
    valid = jnp.array([5, 8])                              # trailing padding
    mask = (jnp.arange(L)[None, :] < valid[:, None]).astype(jnp.float32)
    x = x * mask[:, :, None]

    out = jax.block_until_ready(pos_enc(x, weight))
    ref = pos_enc_reference(x, weight)
    assert out.shape == (B, L, emb_dims)
    assert jnp.allclose(out, ref, atol=1e-5), "mismatch vs reference (3-D A)"

    # --- config B: L not a multiple of 8, odd batch, fully-padded row -----
    B2, L2, D2 = 3, 12, 5
    weight2 = make_weight(k_w2, 20, emb_dims)              # [21, 32]
    x2 = jax.random.normal(k_x2, (B2, L2, D2), dtype=jnp.float32)
    valid2 = jnp.array([0, 7, 12])
    mask2 = (jnp.arange(L2)[None, :] < valid2[:, None]).astype(jnp.float32)
    x2 = x2 * mask2[:, :, None]
    out2 = jax.block_until_ready(pos_enc(x2, weight2))
    assert jnp.allclose(out2, pos_enc_reference(x2, weight2), atol=1e-5), \
        "mismatch vs reference (3-D B)"

    # --- config C: 2-D input path -----------------------------------------
    x3 = (jnp.arange(B * L).reshape(B, L) % 7).astype(jnp.float32)
    out3 = jax.block_until_ready(pos_enc(x3, weight))
    assert jnp.allclose(out3, pos_enc_reference(x3, weight), atol=1e-5), \
        "mismatch vs reference (2-D)"

    print("KERNEL_OK")
</pallas_src>

<mosaic_0001>
module attributes {stable_mosaic.version = 11 : i64} {
  func.func @posenc_kernel(%arg0: i32, %arg1: i32, %arg2: memref<2xi32, #tpu.memory_space<smem>>, %arg3: memref<8x32xf32, #tpu.memory_space<vmem>>, %arg4: memref<2x8x32xf32, #tpu.memory_space<vmem>>) attributes {dimension_semantics = [#tpu.dimension_semantics<parallel>, #tpu.dimension_semantics<parallel>], iteration_bounds = array<i64: 1, 1>, scalar_prefetch = 1 : i64, scratch_operands = 0 : i64, tpu.core_type = #tpu.core_type<tc>, window_params = [{pipeline_mode = #tpu.pipeline_mode<synchronous>, transform_indices = @transform_0, window_bounds = array<i64: 8, 32>}, {transform_indices = @transform_1, window_bounds = array<i64: 2, 8, 32>}]} {
    %c0 = arith.constant 0 : index
    %c0_0 = arith.constant 0 : index
    %0 = vector.load %arg3[%c0, %c0_0] : memref<8x32xf32, #tpu.memory_space<vmem>>, vector<8x32xf32>
    %1 = tpu.iota {dimensions = array<i32: 0>} : vector<8x32xi32>
    %c8_i32 = arith.constant 8 : i32
    %2 = arith.muli %arg0, %c8_i32 : i32
    %3 = vector.broadcast %2 : i32 to vector<8x32xi32>
    %4 = arith.addi %1, %3 : vector<8x32xi32>
    %c2_i32 = arith.constant 2 : i32
    %5 = arith.muli %arg1, %c2_i32 : i32
    %c0_i32 = arith.constant 0 : i32
    %6 = arith.addi %5, %c0_i32 : i32
    %c1_i32 = arith.constant 1 : i32
    %7 = arith.minsi %6, %c1_i32 : i32
    %8 = arith.index_cast %7 : i32 to index
    %9 = memref.load %arg2[%8] : memref<2xi32, #tpu.memory_space<smem>>
    %10 = vector.broadcast %9 : i32 to vector<8x32xi32>
    %11 = arith.cmpi slt, %4, %10 : vector<8x32xi32>
    %cst = arith.constant 0.000000e+00 : f32
    %12 = vector.broadcast %cst : f32 to vector<8x32xf32>
    %13 = arith.select %11, %0, %12 : vector<8x32xi1>, vector<8x32xf32>
    %c0_1 = arith.constant 0 : index
    %c0_2 = arith.constant 0 : index
    %c0_3 = arith.constant 0 : index
    %14 = vector.load %arg4[%c0_1, %c0_2, %c0_3] : memref<2x8x32xf32, #tpu.memory_space<vmem>>, vector<1x8x32xf32>
    %15 = vector.shape_cast %14 : vector<1x8x32xf32> to vector<8x32xf32>
    %16 = vector.shape_cast %13 : vector<8x32xf32> to vector<1x8x32xf32>
    tpu.vector_store %arg4[%c0_1, %c0_2, %c0_3], %16 {strides = array<i32>} : memref<2x8x32xf32, #tpu.memory_space<vmem>>, vector<1x8x32xf32>,
    %c2_i32_4 = arith.constant 2 : i32
    %17 = arith.muli %arg1, %c2_i32_4 : i32
    %c1_i32_5 = arith.constant 1 : i32
    %18 = arith.addi %17, %c1_i32_5 : i32
    %c1_i32_6 = arith.constant 1 : i32
    %19 = arith.minsi %18, %c1_i32_6 : i32
    %20 = arith.index_cast %19 : i32 to index
    %21 = memref.load %arg2[%20] : memref<2xi32, #tpu.memory_space<smem>>
    %22 = vector.broadcast %21 : i32 to vector<8x32xi32>
    %23 = arith.cmpi slt, %4, %22 : vector<8x32xi32>
    %cst_7 = arith.constant 0.000000e+00 : f32
    %24 = vector.broadcast %cst_7 : f32 to vector<8x32xf32>
    %25 = arith.select %23, %0, %24 : vector<8x32xi1>, vector<8x32xf32>
    %c1 = arith.constant 1 : index
    %c0_8 = arith.constant 0 : index
    %c0_9 = arith.constant 0 : index
    %26 = vector.load %arg4[%c1, %c0_8, %c0_9] : memref<2x8x32xf32, #tpu.memory_space<vmem>>, vector<1x8x32xf32>
    %27 = vector.shape_cast %26 : vector<1x8x32xf32> to vector<8x32xf32>
    %28 = vector.shape_cast %25 : vector<8x32xf32> to vector<1x8x32xf32>
    tpu.vector_store %arg4[%c1, %c0_8, %c0_9], %28 {strides = array<i32>} : memref<2x8x32xf32, #tpu.memory_space<vmem>>, vector<1x8x32xf32>,
    return
  }
  func.func @transform_0(%arg0: i32, %arg1: i32, %arg2: memref<2xi32, #tpu.memory_space<smem>>) -> (i32, i32) {
    %c0_i32 = arith.constant 0 : i32
    %c0_i32_0 = arith.constant 0 : i32
    return %arg0, %c0_i32 : i32, i32
  }
  func.func @transform_1(%arg0: i32, %arg1: i32, %arg2: memref<2xi32, #tpu.memory_space<smem>>) -> (i32, i32, i32) {
    %c0_i32 = arith.constant 0 : i32
    %c0_i32_0 = arith.constant 0 : i32
    return %arg1, %arg0, %c0_i32 : i32, i32, i32
  }
}

module attributes {stable_mosaic.version = 11 : i64} {
  func.func @posenc_kernel(%arg0: i32, %arg1: i32, %arg2: memref<2xi32, #tpu.memory_space<smem>>, %arg3: memref<8x32xf32, #tpu.memory_space<vmem>>, %arg4: memref<2x8x32xf32, #tpu.memory_space<vmem>>) attributes {dimension_semantics = [#tpu.dimension_semantics<parallel>, #tpu.dimension_semantics<parallel>], iteration_bounds = array<i64: 1, 1>, scalar_prefetch = 1 : i64, scratch_operands = 0 : i64, tpu.core_type = #tpu.core_type<tc>, window_params = [{transform_indices = @transform_0, window_bounds = array<i64: 8, 32>}, {transform_indices = @transform_1, window_bounds = array<i64: 2, 8, 32>}]} {
    %c0 = arith.constant 0 : index
    %c0_0 = arith.constant 0 : index
    %0 = vector.load %arg3[%c0, %c0_0] : memref<8x32xf32, #tpu.memory_space<vmem>>, vector<8x32xf32>
    %1 = tpu.iota {dimensions = array<i32: 0>} : vector<8x32xi32>
    %c8_i32 = arith.constant 8 : i32
    %2 = arith.muli %arg0, %c8_i32 : i32
    %3 = vector.broadcast %2 : i32 to vector<8x32xi32>
    %4 = arith.addi %1, %3 : vector<8x32xi32>
    %c2_i32 = arith.constant 2 : i32
    %5 = arith.muli %arg1, %c2_i32 : i32
    %c0_i32 = arith.constant 0 : i32
    %6 = arith.addi %5, %c0_i32 : i32
    %c1_i32 = arith.constant 1 : i32
    %7 = arith.minsi %6, %c1_i32 : i32
    %8 = arith.index_cast %7 : i32 to index
    %9 = memref.load %arg2[%8] : memref<2xi32, #tpu.memory_space<smem>>
    %10 = vector.broadcast %9 : i32 to vector<8x32xi32>
    %11 = arith.cmpi slt, %4, %10 : vector<8x32xi32>
    %cst = arith.constant 0.000000e+00 : f32
    %12 = vector.broadcast %cst : f32 to vector<8x32xf32>
    %13 = arith.select %11, %0, %12 : vector<8x32xi1>, vector<8x32xf32>
    %c0_1 = arith.constant 0 : index
    %c0_2 = arith.constant 0 : index
    %c0_3 = arith.constant 0 : index
    %14 = vector.load %arg4[%c0_1, %c0_2, %c0_3] : memref<2x8x32xf32, #tpu.memory_space<vmem>>, vector<1x8x32xf32>
    %15 = vector.shape_cast %14 : vector<1x8x32xf32> to vector<8x32xf32>
    %16 = vector.shape_cast %13 : vector<8x32xf32> to vector<1x8x32xf32>
    tpu.vector_store %arg4[%c0_1, %c0_2, %c0_3], %16 {strides = array<i32>} : memref<2x8x32xf32, #tpu.memory_space<vmem>>, vector<1x8x32xf32>,
    %c2_i32_4 = arith.constant 2 : i32
    %17 = arith.muli %arg1, %c2_i32_4 : i32
    %c1_i32_5 = arith.constant 1 : i32
    %18 = arith.addi %17, %c1_i32_5 : i32
    %c1_i32_6 = arith.constant 1 : i32
    %19 = arith.minsi %18, %c1_i32_6 : i32
    %20 = arith.index_cast %19 : i32 to index
    %21 = memref.load %arg2[%20] : memref<2xi32, #tpu.memory_space<smem>>
    %22 = vector.broadcast %21 : i32 to vector<8x32xi32>
    %23 = arith.cmpi slt, %4, %22 : vector<8x32xi32>
    %cst_7 = arith.constant 0.000000e+00 : f32
    %24 = vector.broadcast %cst_7 : f32 to vector<8x32xf32>
    %25 = arith.select %23, %0, %24 : vector<8x32xi1>, vector<8x32xf32>
    %c1 = arith.constant 1 : index
    %c0_8 = arith.constant 0 : index
    %c0_9 = arith.constant 0 : index
    %26 = vector.load %arg4[%c1, %c0_8, %c0_9] : memref<2x8x32xf32, #tpu.memory_space<vmem>>, vector<1x8x32xf32>
    %27 = vector.shape_cast %26 : vector<1x8x32xf32> to vector<8x32xf32>
    %28 = vector.shape_cast %25 : vector<8x32xf32> to vector<1x8x32xf32>
    tpu.vector_store %arg4[%c1, %c0_8, %c0_9], %28 {strides = array<i32>} : memref<2x8x32xf32, #tpu.memory_space<vmem>>, vector<1x8x32xf32>,
    return
  }
  func.func @transform_0(%arg0: i32, %arg1: i32, %arg2: memref<2xi32, #tpu.memory_space<smem>>) -> (i32, i32) {
    %c0_i32 = arith.constant 0 : i32
    %c0_i32_0 = arith.constant 0 : i32
    return %arg0, %c0_i32 : i32, i32
  }
  func.func @transform_1(%arg0: i32, %arg1: i32, %arg2: memref<2xi32, #tpu.memory_space<smem>>) -> (i32, i32, i32) {
    %c0_i32 = arith.constant 0 : i32
    %c0_i32_0 = arith.constant 0 : i32
    return %arg1, %arg0, %c0_i32 : i32, i32, i32
  }
}

</mosaic_0001>

<bundles_post_ra>
// kernel: tpu_custom_call.1
= control target key start
LH: loop header
LB: loop body
LE: loop exit
PB: predicated region body
PF: predicated region fallthrough
CT: control target
= control target key end

     0   :  { %s127_s9 = smov [#allocation3]   ;;  %s156_s0 = inlined_call_operand.hbm [shape: s32[2], index: 0, kind: input, shape index: {}]   ;;  %s157_s1 = inlined_call_operand.hbm [shape: f32[8,32], index: 1, kind: input, shape index: {}]   ;;  %s158_s2 = inlined_call_operand.hbm [shape: f32[2,8,32], index: 2, kind: output, shape index: {}]  }
   0x1   :  { %8 = dma.hbm_to_smem %s156_s0, 16, %s127_s9, [#allocation2] }
   0x2   :  { %121 = dma.done.wait [#allocation2], 16 }
   0x3   :  { %122 = vsyncadd [#allocation2], 4294967280 }
   0x4   :  { %10 = sfence }
   0x5   :  { %11 = vsyncpa [#allocation5], 0 }
   0x6   :  { %12 = vsyncpa [#allocation6], 0  ;;  %s128_s12 = smov [#allocation4]  }
   0x7   :  { %s19_s13 = sshll.u32 %s128_s12, 4  ;;  %s20_s13 = int_to_ptr.vmem [resolvable:$true] %s19_s13 }
   0x8   :  { %s89_s14 = scalar_lea.vmem %s20_s13, 128  ;;  %p94_p1 = scmp.lt.s32.totalorder %s20_s13, %s20_s13 }
   0x9   :  { %p90_p0 = scmp.ne.s32.totalorder %s20_s13, %s89_s14  ;;  %p95_p2 = scmp.lt.s32.totalorder %s89_s14, %s89_s14 }
   0xb   :  { %p96_p3 = por %p95_p2, %p94_p1 }
   0xd   :  { %p97_p4 = pnand %p96_p3, %p90_p0 }
   0xf   :  { %100 = shalt.err (!%p97_p4)
}
  0x10   :  { %22 = dma.hbm_to_vmem [thread:$0]  %s157_s1, 128, %s20_s13, [#allocation5]  }
  0x11   :  { %123 = dma.done.wait [#allocation5], 128  }
  0x12   :  { %124 = vsyncadd [#allocation5], 4294967168  ;;  %v27_v0 = vlaneseq  ;;  %s35_s0 = sld [smem:[#allocation3]]  ;;  %s129_s18 = smov [#allocation7]   ;;  %v26_v2 = vld [vmem:[#allocation4] sm:$0xff]  ;;  %vm39_vm0 = vcmask 261120  }
  0x13   :  { %s67_s17 = sld [smem:[#allocation3 + $0x1]]  ;;  %s55_s19 = sshll.u32 %s129_s18, 4  ;;  %s56_s19 = int_to_ptr.vmem [resolvable:$true] %s55_s19 }
  0x14   :  { %v28_v1 = vshrl.u32 %v27_v0, 7  ;;  %s101_s1 = scalar_lea.vmem %s56_s19, 256  ;;  %p106_p6 = scmp.lt.s32.totalorder %s56_s19, %s56_s19 }
  0x15   :  { %p102_p5 = scmp.ne.s32.totalorder %s56_s19, %s101_s1  ;;  %p107_p7 = scmp.lt.s32.totalorder %s101_s1, %s101_s1 }
  0x17   :  { %p108_p8 = por %p107_p7, %p106_p6 }
  0x18   :  { %v36_v3 = vstv %s35_s0 }
  0x19   :  { %vm37_vm1 = vcmp.lt.s32.totalorder %v28_v1, %v36_v3  ;;  %v45_v4 = vstv %s67_s17  ;;  %p109_p9 = pnand %p108_p8, %p102_p5 }
  0x1a   :  { %v38_v5 = vsel %vm37_vm1, %v26_v2, 0.0  ;;  %vm46_vm2 = vcmp.lt.s32.totalorder %v28_v1, %v45_v4 }
  0x1b   :  { %40 = vst.msk [vmem:[#allocation7] sm:$0xff] %vm39_vm0, %v38_v5  ;;  %v47_v6 = vsel %vm46_vm2, %v26_v2, 0.0 }
  0x1c   :  { %49 = vst.msk [vmem:[#allocation7 + $0x8] sm:$0xff] %vm39_vm0, %v47_v6 }
  0x1d   :  { %112 = shalt.err (!%p109_p9)
}
  0x1e   :  { %s130_s20 = smov 128   ;;  %s131_s21 = smov 8  }
  0x1f   :  { %61 = dma.vmem_to_hbm [thread:$0]  %s56_s19, 256, %s158_s2, [#allocation6], %s130_s20, %s130_s20, %s131_s21  }
  0x20   :  { %125 = dma.done.wait [#allocation6], 256  }
  0x21   :  { %126 = vsyncadd [#allocation6], 4294967040 }
  0x22   :  { %65 = vsyncpa [#allocation5], 1 }
  0x23   :  { %66 = vsyncpa [#allocation6], 1 }

// kernel: tpu_custom_call.1
= control target key start
LH: loop header
LB: loop body
LE: loop exit
PB: predicated region body
PF: predicated region fallthrough
CT: control target
= control target key end

     0   :  { %s127_s9 = smov [#allocation3]   ;;  %s156_s0 = inlined_call_operand.hbm [shape: s32[2], index: 0, kind: input, shape index: {}]   ;;  %s157_s1 = inlined_call_operand.hbm [shape: f32[8,32], index: 1, kind: input, shape index: {}]   ;;  %s158_s2 = inlined_call_operand.hbm [shape: f32[2,8,32], index: 2, kind: output, shape index: {}]  }
   0x1   :  { %8 = dma.hbm_to_smem %s156_s0, 16, %s127_s9, [#allocation2] }
   0x2   :  { %121 = dma.done.wait [#allocation2], 16 }
   0x3   :  { %122 = vsyncadd [#allocation2], 4294967280 }
   0x4   :  { %10 = sfence }
   0x5   :  { %11 = vsyncpa [#allocation5], 0 }
   0x6   :  { %12 = vsyncpa [#allocation6], 0  ;;  %s128_s12 = smov [#allocation4]  }
   0x7   :  { %s19_s13 = sshll.u32 %s128_s12, 4  ;;  %s20_s13 = int_to_ptr.vmem [resolvable:$true] %s19_s13 }
   0x8   :  { %s89_s14 = scalar_lea.vmem %s20_s13, 128  ;;  %p94_p1 = scmp.lt.s32.totalorder %s20_s13, %s20_s13 }
   0x9   :  { %p90_p0 = scmp.ne.s32.totalorder %s20_s13, %s89_s14  ;;  %p95_p2 = scmp.lt.s32.totalorder %s89_s14, %s89_s14 }
   0xb   :  { %p96_p3 = por %p95_p2, %p94_p1 }
   0xd   :  { %p97_p4 = pnand %p96_p3, %p90_p0 }
   0xf   :  { %100 = shalt.err (!%p97_p4)
}
  0x10   :  { %22 = dma.hbm_to_vmem [thread:$0]  %s157_s1, 128, %s20_s13, [#allocation5]  }
  0x11   :  { %123 = dma.done.wait [#allocation5], 128  }
  0x12   :  { %124 = vsyncadd [#allocation5], 4294967168  ;;  %v27_v0 = vlaneseq  ;;  %s35_s0 = sld [smem:[#allocation3]]  ;;  %s129_s18 = smov [#allocation7]   ;;  %v26_v2 = vld [vmem:[#allocation4] sm:$0xff]  ;;  %vm39_vm0 = vcmask 261120  }
  0x13   :  { %s67_s17 = sld [smem:[#allocation3 + $0x1]]  ;;  %s55_s19 = sshll.u32 %s129_s18, 4  ;;  %s56_s19 = int_to_ptr.vmem [resolvable:$true] %s55_s19 }
  0x14   :  { %v28_v1 = vshrl.u32 %v27_v0, 7  ;;  %s101_s1 = scalar_lea.vmem %s56_s19, 256  ;;  %p106_p6 = scmp.lt.s32.totalorder %s56_s19, %s56_s19 }
  0x15   :  { %p102_p5 = scmp.ne.s32.totalorder %s56_s19, %s101_s1  ;;  %p107_p7 = scmp.lt.s32.totalorder %s101_s1, %s101_s1 }
  0x17   :  { %p108_p8 = por %p107_p7, %p106_p6 }
  0x18   :  { %v36_v3 = vstv %s35_s0 }
  0x19   :  { %vm37_vm1 = vcmp.lt.s32.totalorder %v28_v1, %v36_v3  ;;  %v45_v4 = vstv %s67_s17  ;;  %p109_p9 = pnand %p108_p8, %p102_p5 }
  0x1a   :  { %v38_v5 = vsel %vm37_vm1, %v26_v2, 0.0  ;;  %vm46_vm2 = vcmp.lt.s32.totalorder %v28_v1, %v45_v4 }
  0x1b   :  { %40 = vst.msk [vmem:[#allocation7] sm:$0xff] %vm39_vm0, %v38_v5  ;;  %v47_v6 = vsel %vm46_vm2, %v26_v2, 0.0 }
  0x1c   :  { %49 = vst.msk [vmem:[#allocation7 + $0x8] sm:$0xff] %vm39_vm0, %v47_v6 }
  0x1d   :  { %112 = shalt.err (!%p109_p9)
}
  0x1e   :  { %s130_s20 = smov 128   ;;  %s131_s21 = smov 8  }
  0x1f   :  { %61 = dma.vmem_to_hbm [thread:$0]  %s56_s19, 256, %s158_s2, [#allocation6], %s130_s20, %s130_s20, %s131_s21  }
  0x20   :  { %125 = dma.done.wait [#allocation6], 256  }
  0x21   :  { %126 = vsyncadd [#allocation6], 4294967040 }
  0x22   :  { %65 = vsyncpa [#allocation5], 1 }
  0x23   :  { %66 = vsyncpa [#allocation6], 1 }

</bundles_post_ra>
